<compile_context>
chip_gen: v7x
topology: tpu7x:2x2x1
jax: 0.10.0
libtpu: 0.0.40
codegen_flags: <defaults>
</compile_context>

<pallas_src>
from functools import partial

import jax
import jax.numpy as jnp
import numpy as np
from jax.experimental import pallas as pl
from jax.experimental.pallas import tpu as pltpu

_LANE = 128
_SUBLANE = 8


def _round_up(a, m):
    return (a + m - 1) // m * m


def mlp_walker_kernel(x_ref, w1_ref, w2_ref, w3_ref, bias_ref, o_ref):
    """3-layer MLP + row softmax on one (tb, N) batch tile.

    x / output are kept at the real feature width N (lane-masked stores on a
    16-wide output are negligible next to the 8x HBM saving); only the hidden
    dims of the weights are padded to 128 lanes with zeros (exact through
    Linear + ReLU).
    """
    n = o_ref.shape[1]          # real feature width (unpadded)
    h1w = w1_ref.shape[1]       # padded hidden width 1
    h2w = w2_ref.shape[1]       # padded hidden width 2
    b1 = bias_ref[0:1, :h1w]
    b2 = bias_ref[1:2, :h2w]
    b3 = bias_ref[2:3, :n]

    x = x_ref[...].astype(jnp.float32)

    # Hidden layer 1: Linear + ReLU
    h = jnp.dot(x, w1_ref[...], preferred_element_type=jnp.float32) + b1
    h = jnp.maximum(h, 0.0)
    # Hidden layer 2: Linear + ReLU
    h = jnp.dot(h, w2_ref[...], preferred_element_type=jnp.float32) + b2
    h = jnp.maximum(h, 0.0)
    # Output layer: Linear + softmax over the feature axis (dim=1).
    # w3 only produces the N real columns, so max/sum are over exactly the
    # real logits and rows sum to 1.
    logits = jnp.dot(h, w3_ref[...], preferred_element_type=jnp.float32) + b3

    m = jnp.max(logits, axis=1, keepdims=True)
    e = jnp.exp(logits - m)
    o_ref[...] = e * pl.reciprocal(jnp.sum(e, axis=1, keepdims=True),
                                   approx=False)


def prepare_params(params, dtype=jnp.float32):
    """One-time padding of the weights/biases (hoisted out of the hot path)."""
    (w1, b1), (w2, b2), (w3, b3) = params
    N, H1 = w1.shape
    H2 = w2.shape[1]
    H1p = _round_up(H1, _LANE)
    H2p = _round_up(H2, _LANE)
    P = max(H1p, H2p, _round_up(N, _LANE))

    w1p = jnp.pad(w1.astype(dtype), ((0, 0), (0, H1p - H1)))
    w2p = jnp.pad(w2.astype(dtype), ((0, H1p - H1), (0, H2p - H2)))
    w3p = jnp.pad(w3.astype(dtype), ((0, H2p - H2), (0, 0)))

    bias = jnp.zeros((3, P), dtype)
    bias = bias.at[0, :H1].set(b1.astype(dtype).reshape(-1))
    bias = bias.at[1, :H2].set(b2.astype(dtype).reshape(-1))
    bias = bias.at[2, :N].set(b3.astype(dtype).reshape(-1))
    return w1p, w2p, w3p, bias


def _pick_tb(B, tb=None):
    """Batch tile: big enough to amortize per-step overhead, >= 2 grid steps
    when the batch is large enough (so v7x's two TensorCores both get work)."""
    if tb is None:
        tb = 1024
    two_way = _round_up(pl.cdiv(B, 2), _SUBLANE)
    tb = min(tb, max(two_way, _SUBLANE))
    tb = min(tb, _round_up(B, _SUBLANE))
    return max(_round_up(tb, _SUBLANE), _SUBLANE)


@partial(jax.jit, static_argnames=("tb",))
def mlp_walker_forward(x, w1p, w2p, w3p, bias, *, tb=None):
    """Full MLP forward pass in one Pallas kernel, tiled over the batch."""
    B, N = x.shape
    tb = _pick_tb(B, tb)
    grid = (pl.cdiv(B, tb),)   # ragged edge block handled by Pallas clipping

    def whole(arr):
        nd = arr.ndim
        return pl.BlockSpec(arr.shape, lambda i: (0,) * nd)

    return pl.pallas_call(
        mlp_walker_kernel,
        out_shape=jax.ShapeDtypeStruct((B, N), jnp.float32),
        grid_spec=pltpu.PrefetchScalarGridSpec(
            num_scalar_prefetch=0,
            grid=grid,
            in_specs=[
                pl.BlockSpec((tb, N), lambda i: (i, 0)),     # x tile, unpadded
                whole(w1p), whole(w2p), whole(w3p), whole(bias),
            ],
            out_specs=pl.BlockSpec((tb, N), lambda i: (i, 0)),  # unpadded out
        ),
        compiler_params=pltpu.CompilerParams(
            dimension_semantics=("parallel",)),
    )(x.astype(jnp.float32), w1p, w2p, w3p, bias)


def mlp_walker_policy(x, params, *, tb=None):
    """Convenience wrapper: pad params and run the jitted forward."""
    w1p, w2p, w3p, bias = prepare_params(params)
    return mlp_walker_forward(x, w1p, w2p, w3p, bias, tb=tb)


def init_params(key, N, layers=(32, 32)):
    """Deterministic init mimicking nn.Linear's U(-1/sqrt(fan_in), ...)."""
    sizes = [N] + list(layers) + [N]
    params = []
    for i in range(len(sizes) - 1):
        key, kw, kb = jax.random.split(key, 3)
        fan_in, fan_out = sizes[i], sizes[i + 1]
        bound = 1.0 / np.sqrt(fan_in)
        w = jax.random.uniform(kw, (fan_in, fan_out), jnp.float32,
                               minval=-bound, maxval=bound)
        b = jax.random.uniform(kb, (1, fan_out), jnp.float32,
                               minval=-bound, maxval=bound)
        params.append((w, b))
    return params


def mlp_walker_reference(x, params):
    (w1, b1), (w2, b2), (w3, b3) = params
    h = jnp.maximum(x @ w1 + b1, 0.0)
    h = jnp.maximum(h @ w2 + b2, 0.0)
    logits = h @ w3 + b3
    return jax.nn.softmax(logits, axis=1)


if __name__ == "__main__":
    N = 16            # number of walker states
    layers = (32, 32)

    key = jax.random.PRNGKey(0)
    key, kx1, kx2 = jax.random.split(key, 3)
    params = init_params(key, N, layers)
    padded = prepare_params(params)      # one-time padding (out of hot path)

    # Case 1: batch divisible by the sublane tile.
    B1 = 8
    logits_in = jax.random.uniform(kx1, (B1, N), jnp.float32)
    x1 = logits_in / jnp.sum(logits_in, axis=1, keepdims=True)
    out1 = jax.block_until_ready(mlp_walker_forward(x1, *padded))
    ref1 = mlp_walker_reference(x1, params)
    np.testing.assert_allclose(np.asarray(out1), np.asarray(ref1),
                               rtol=1e-5, atol=1e-6)
    np.testing.assert_allclose(np.asarray(jnp.sum(out1, axis=1)),
                               np.ones(B1), rtol=1e-5, atol=1e-6)

    # Case 2: uneven batch to exercise the ragged edge-block path.
    B2 = 5
    logits_in = jax.random.uniform(kx2, (B2, N), jnp.float32)
    x2 = logits_in / jnp.sum(logits_in, axis=1, keepdims=True)
    out2 = jax.block_until_ready(mlp_walker_forward(x2, *padded))
    ref2 = mlp_walker_reference(x2, params)
    np.testing.assert_allclose(np.asarray(out2), np.asarray(ref2),
                               rtol=1e-5, atol=1e-6)
    np.testing.assert_allclose(np.asarray(jnp.sum(out2, axis=1)),
                               np.ones(B2), rtol=1e-5, atol=1e-6)

    print("KERNEL_OK")
</pallas_src>

<mosaic_0001>
module attributes {stable_mosaic.version = 11 : i64} {
  func.func @mlp_walker_kernel(%arg0: i32, %arg1: memref<8x16xf32, #tpu.memory_space<vmem>>, %arg2: memref<16x128xf32, #tpu.memory_space<vmem>>, %arg3: memref<128x128xf32, #tpu.memory_space<vmem>>, %arg4: memref<128x16xf32, #tpu.memory_space<vmem>>, %arg5: memref<3x128xf32, #tpu.memory_space<vmem>>, %arg6: memref<8x16xf32, #tpu.memory_space<vmem>>) attributes {dimension_semantics = [#tpu.dimension_semantics<parallel>], iteration_bounds = array<i64: 1>, scalar_prefetch = 0 : i64, scratch_operands = 0 : i64, tpu.core_type = #tpu.core_type<tc>, window_params = [{transform_indices = @transform_0, window_bounds = array<i64: 8, 16>}, {pipeline_mode = #tpu.pipeline_mode<synchronous>, transform_indices = @transform_1, window_bounds = array<i64: 16, 128>}, {pipeline_mode = #tpu.pipeline_mode<synchronous>, transform_indices = @transform_2, window_bounds = array<i64: 128, 128>}, {pipeline_mode = #tpu.pipeline_mode<synchronous>, transform_indices = @transform_3, window_bounds = array<i64: 128, 16>}, {pipeline_mode = #tpu.pipeline_mode<synchronous>, transform_indices = @transform_4, window_bounds = array<i64: 3, 128>}, {transform_indices = @transform_5, window_bounds = array<i64: 8, 16>}]} {
    %c0 = arith.constant 0 : index
    %c0_0 = arith.constant 0 : index
    %0 = vector.load %arg5[%c0, %c0_0] : memref<3x128xf32, #tpu.memory_space<vmem>>, vector<1x128xf32>
    %c1 = arith.constant 1 : index
    %c0_1 = arith.constant 0 : index
    %1 = vector.load %arg5[%c1, %c0_1] : memref<3x128xf32, #tpu.memory_space<vmem>>, vector<1x128xf32>
    %c2 = arith.constant 2 : index
    %c0_2 = arith.constant 0 : index
    %2 = vector.load %arg5[%c2, %c0_2] : memref<3x128xf32, #tpu.memory_space<vmem>>, vector<1x16xf32>
    %c0_3 = arith.constant 0 : index
    %c0_4 = arith.constant 0 : index
    %3 = vector.load %arg1[%c0_3, %c0_4] : memref<8x16xf32, #tpu.memory_space<vmem>>, vector<8x16xf32>
    %c0_5 = arith.constant 0 : index
    %c0_6 = arith.constant 0 : index
    %4 = vector.load %arg2[%c0_5, %c0_6] : memref<16x128xf32, #tpu.memory_space<vmem>>, vector<16x128xf32>
    %cst = arith.constant dense<0.000000e+00> : vector<8x128xf32>
    %5 = tpu.matmul %3, %4, %cst {dimension_numbers = #tpu.dot_dimension_numbers<[1], [0], [0], [1], [0, 0, 1, 1], [], []>} : vector<8x16xf32>, vector<16x128xf32>, vector<8x128xf32> -> vector<8x128xf32>
    %6 = vector.broadcast %0 : vector<1x128xf32> to vector<8x128xf32>
    %7 = arith.addf %5, %6 : vector<8x128xf32>
    %cst_7 = arith.constant 0.000000e+00 : f32
    %8 = vector.broadcast %cst_7 : f32 to vector<8x128xf32>
    %9 = arith.maximumf %7, %8 : vector<8x128xf32>
    %c0_8 = arith.constant 0 : index
    %c0_9 = arith.constant 0 : index
    %10 = vector.load %arg3[%c0_8, %c0_9] : memref<128x128xf32, #tpu.memory_space<vmem>>, vector<128x128xf32>
    %cst_10 = arith.constant dense<0.000000e+00> : vector<8x128xf32>
    %11 = tpu.matmul %9, %10, %cst_10 {dimension_numbers = #tpu.dot_dimension_numbers<[1], [0], [0], [1], [0, 0, 1, 1], [], []>} : vector<8x128xf32>, vector<128x128xf32>, vector<8x128xf32> -> vector<8x128xf32>
    %12 = vector.broadcast %1 : vector<1x128xf32> to vector<8x128xf32>
    %13 = arith.addf %11, %12 : vector<8x128xf32>
    %cst_11 = arith.constant 0.000000e+00 : f32
    %14 = vector.broadcast %cst_11 : f32 to vector<8x128xf32>
    %15 = arith.maximumf %13, %14 : vector<8x128xf32>
    %c0_12 = arith.constant 0 : index
    %c0_13 = arith.constant 0 : index
    %16 = vector.load %arg4[%c0_12, %c0_13] : memref<128x16xf32, #tpu.memory_space<vmem>>, vector<128x16xf32>
    %cst_14 = arith.constant dense<0.000000e+00> : vector<8x16xf32>
    %17 = tpu.matmul %15, %16, %cst_14 {dimension_numbers = #tpu.dot_dimension_numbers<[1], [0], [0], [1], [0, 0, 1, 1], [], []>} : vector<8x128xf32>, vector<128x16xf32>, vector<8x16xf32> -> vector<8x16xf32>
    %18 = vector.broadcast %2 : vector<1x16xf32> to vector<8x16xf32>
    %19 = arith.addf %17, %18 : vector<8x16xf32>
    %cst_15 = arith.constant dense<0xFF800000> : vector<8xf32>
    %20 = vector.multi_reduction <maximumf>, %19, %cst_15 [1] : vector<8x16xf32> to vector<8xf32>
    %21 = vector.shape_cast %20 : vector<8xf32> to vector<8x1xf32>
    %22 = vector.broadcast %21 : vector<8x1xf32> to vector<8x16xf32>
    %23 = arith.subf %19, %22 : vector<8x16xf32>
    %24 = math.exp %23 : vector<8x16xf32>
    %cst_16 = arith.constant dense<0.000000e+00> : vector<8xf32>
    %25 = vector.multi_reduction <add>, %24, %cst_16 [1] : vector<8x16xf32> to vector<8xf32>
    %26 = vector.shape_cast %25 : vector<8xf32> to vector<8x1xf32>
    %27 = tpu.reciprocal %26 : vector<8x1xf32> -> vector<8x1xf32>
    %28 = vector.broadcast %27 : vector<8x1xf32> to vector<8x16xf32>
    %29 = arith.mulf %24, %28 : vector<8x16xf32>
    %c0_17 = arith.constant 0 : index
    %c0_18 = arith.constant 0 : index
    %30 = vector.load %arg6[%c0_17, %c0_18] : memref<8x16xf32, #tpu.memory_space<vmem>>, vector<8x16xf32>
    tpu.vector_store %arg6[%c0_17, %c0_18], %29 {strides = array<i32>} : memref<8x16xf32, #tpu.memory_space<vmem>>, vector<8x16xf32>,
    return
  }
  func.func @transform_0(%arg0: i32) -> (i32, i32) {
    %c0_i32 = arith.constant 0 : i32
    %c0_i32_0 = arith.constant 0 : i32
    return %arg0, %c0_i32 : i32, i32
  }
  func.func @transform_1(%arg0: i32) -> (i32, i32) {
    %c0_i32 = arith.constant 0 : i32
    %c0_i32_0 = arith.constant 0 : i32
    %c0_i32_1 = arith.constant 0 : i32
    return %c0_i32, %c0_i32_0 : i32, i32
  }
  func.func @transform_2(%arg0: i32) -> (i32, i32) {
    %c0_i32 = arith.constant 0 : i32
    %c0_i32_0 = arith.constant 0 : i32
    %c0_i32_1 = arith.constant 0 : i32
    return %c0_i32, %c0_i32_0 : i32, i32
  }
  func.func @transform_3(%arg0: i32) -> (i32, i32) {
    %c0_i32 = arith.constant 0 : i32
    %c0_i32_0 = arith.constant 0 : i32
    %c0_i32_1 = arith.constant 0 : i32
    return %c0_i32, %c0_i32_0 : i32, i32
  }
  func.func @transform_4(%arg0: i32) -> (i32, i32) {
    %c0_i32 = arith.constant 0 : i32
    %c0_i32_0 = arith.constant 0 : i32
    %c0_i32_1 = arith.constant 0 : i32
    return %c0_i32, %c0_i32_0 : i32, i32
  }
  func.func @transform_5(%arg0: i32) -> (i32, i32) {
    %c0_i32 = arith.constant 0 : i32
    %c0_i32_0 = arith.constant 0 : i32
    return %arg0, %c0_i32 : i32, i32
  }
}

</mosaic_0001>

<bundles_post_ra>
// kernel: mlp_walker_forward.1
= control target key start
LH: loop header
LB: loop body
LE: loop exit
PB: predicated region body
PF: predicated region fallthrough
CT: control target
= control target key end

     0   :  { %10 = vsyncpa [#allocation3], 0  ;;  %s746_s0 = inlined_call_operand.hbm [shape: f32[8,16], index: 0, kind: input, shape index: {}]   ;;  %s747_s1 = inlined_call_operand.vmem [shape: f32[16,128], index: 1, kind: input, shape index: {}]   ;;  %s748_s2 = inlined_call_operand.vmem [shape: f32[128,128], index: 2, kind: input, shape index: {}]   ;;  %s749_s3 = inlined_call_operand.vmem [shape: f32[128,16], index: 3, kind: input, shape index: {}]   ;;  %s750_s4 = inlined_call_operand.vmem [shape: f32[3,128], index: 4, kind: input, shape index: {}]   ;;  %s751_s5 = inlined_call_operand.hbm [shape: f32[8,16], index: 5, kind: output, shape index: {}]  }
   0x1   :  { %11 = vsyncpa [#allocation4], 0  ;;  %s552_s18 = smov [#allocation2]   ;;  %s504_s22 = scalar_lea.hbm %s746_s0, 128 }
   0x2   :  { %s18_s19 = sshll.u32 %s552_s18, 4  ;;  %p505_p0 = scmp.ne.s32.totalorder %s746_s0, %s504_s22  ;;  %s19_s19 = int_to_ptr.vmem [resolvable:$true] %s18_s19 }
   0x3   :  { %p508_p1 = scmp.lt.u32.totalorder %s504_s22, %s746_s0 }
   0x5   :  { %p510_p2 = pnand %p508_p1, %p505_p0 }
   0x7   :  { %513 = shalt.err (!%p510_p2)
}
   0x8   :  { %s514_s27 = scalar_lea.vmem %s19_s19, 128  ;;  %p519_p4 = scmp.lt.s32.totalorder %s19_s19, %s19_s19 }
   0x9   :  { %p515_p3 = scmp.ne.s32.totalorder %s19_s19, %s514_s27  ;;  %p520_p5 = scmp.lt.s32.totalorder %s514_s27, %s514_s27 }
   0xb   :  { %p521_p6 = por %p520_p5, %p519_p4 }
   0xd   :  { %p522_p7 = pnand %p521_p6, %p515_p3 }
   0xf   :  { %525 = shalt.err (!%p522_p7)
}
  0x10   :  { %21 = dma.hbm_to_vmem [thread:$0]  %s746_s0, 128, %s19_s19, [#allocation3]  }
  0x11   :  { %548 = dma.done.wait [#allocation3], 128  }
  0x12   :  { %549 = vsyncadd [#allocation3], 4294967168  ;;  %v553_v0 = vmov 0.0|0.0   ;;  %vm554_vm0 = vmmov 0   ;;  %v555_v1 = vmov 0.0   ;;  %v37_v2 = vld [vmem:[%s747_s1] sm:$0xff] }
  0x13   :  { %444 = vmatprep.subr.bf16.mxu0 %v553_v0  ;;  %371 = vmatprep.mubr.msk.f32.mxu0 %vm554_vm0, %v555_v1  ;;  %v38_v3 = vld [vmem:[%s747_s1 + $0x8] sm:$0xff]  ;;  %v118_v5 = vld [vmem:[%s748_s2] sm:$0xff]  ;;  %v120_v7 = vld [vmem:[%s748_s2 + $0x10] sm:$0xff]  ;;  %vm43_vm1 = vcmask 130048  }
  0x14   :  { %447 = vmatprep.subr.bf16.mxu1 %v553_v0  ;;  %406 = vmatprep.mubr.msk.f32.mxu1 %vm554_vm0, %v555_v1  ;;  %v445_v4 = vpack.c.bf16 %v38_v3, %v37_v2  ;;  %v119_v6 = vld [vmem:[%s748_s2 + $0x8] sm:$0xff]  ;;  %v121_v9 = vld [vmem:[%s748_s2 + $0x18] sm:$0xff]  ;;  %v36_v10 = vld [vmem:[#allocation2] sm:$0xff] }
  0x15   :  { %v448_v8 = vpack.c.bf16 %v119_v6, %v118_v5  ;;  %v451_v11 = vpack.c.bf16 %v121_v9, %v120_v7  ;;  %v122_v12 = vld [vmem:[%s748_s2 + $0x20] sm:$0xff]  ;;  %v123_v13 = vld [vmem:[%s748_s2 + $0x28] sm:$0xff]  ;;  %v124_v15 = vld [vmem:[%s748_s2 + $0x30] sm:$0xff] }
  0x16   :  { %446 = vmatpush3.bf16.msra.mxu0 %v445_v4  ;;  %v454_v14 = vpack.c.bf16 %v123_v13, %v122_v12  ;;  %v125_v16 = vld [vmem:[%s748_s2 + $0x38] sm:$0xff]  ;;  %v126_v18 = vld [vmem:[%s748_s2 + $0x40] sm:$0xff]  ;;  %v127_v19 = vld [vmem:[%s748_s2 + $0x48] sm:$0xff] }
  0x17   :  { %449 = vmatpush3.bf16.msra.mxu1 %v448_v8  ;;  %471 = vmatprep.subr.bf16.mxu0 %v553_v0  ;;  %v457_v17 = vpack.c.bf16 %v125_v16, %v124_v15  ;;  %v460_v20 = vpack.c.bf16 %v127_v19, %v126_v18  ;;  %v128_v21 = vld [vmem:[%s748_s2 + $0x50] sm:$0xff]  ;;  %v129_v22 = vld [vmem:[%s748_s2 + $0x58] sm:$0xff]  ;;  %v130_v24 = vld [vmem:[%s748_s2 + $0x60] sm:$0xff] }
  0x18   :  { %450 = vmatprep.subr.bf16.mxu1 %v553_v0  ;;  %v463_v23 = vpack.c.bf16 %v129_v22, %v128_v21  ;;  %v131_v25 = vld [vmem:[%s748_s2 + $0x68] sm:$0xff]  ;;  %v132_v27 = vld [vmem:[%s748_s2 + $0x70] sm:$0xff]  ;;  %v133_v28 = vld [vmem:[%s748_s2 + $0x78] sm:$0xff] }
  0x19   :  { %372 = vmatmul.mubr.msk.f32.vlgmr.msra.gmra.mrb[0].mxu0 %vm43_vm1, %v36_v10  ;;  %v466_v26 = vpack.c.bf16 %v131_v25, %v130_v24  ;;  %v469_v29 = vpack.c.bf16 %v133_v28, %v132_v27  ;;  %v209_v30 = vld [vmem:[%s749_s3] sm:$0xff]  ;;  %v210_v31 = vld [vmem:[%s749_s3 + $0x8] sm:$0xff]  ;;  %v211_v32 = vld [vmem:[%s749_s3 + $0x10] sm:$0xff] }
  0x1a   :  { %441 = vmatprep.mubr.msk.f32.mxu0 %vm554_vm0, %v555_v1  ;;  %v472_v33 = vpack.c.bf16 %v210_v31, %v209_v30  ;;  %v212_v34 = vld [vmem:[%s749_s3 + $0x18] sm:$0xff]  ;;  %v213_v36 = vld [vmem:[%s749_s3 + $0x20] sm:$0xff]  ;;  %v214_v37 = vld [vmem:[%s749_s3 + $0x28] sm:$0xff] }
  0x1b   :  { %452 = vmatpush3.bf16.msra.mxu1 %v451_v11  ;;  %v475_v35 = vpack.c.bf16 %v212_v34, %v211_v32  ;;  %v478_v38 = vpack.c.bf16 %v214_v37, %v213_v36  ;;  %v215_v39 = vld [vmem:[%s749_s3 + $0x30] sm:$0xff]  ;;  %v216_v40 = vld [vmem:[%s749_s3 + $0x38] sm:$0xff]  ;;  %v217_v42 = vld [vmem:[%s749_s3 + $0x40] sm:$0xff] }
  0x1c   :  { %453 = vmatprep.subr.bf16.mxu1 %v553_v0  ;;  %473 = vmatpush3.bf16.msra.mxu0 %v472_v33  ;;  %v481_v41 = vpack.c.bf16 %v216_v40, %v215_v39  ;;  %v218_v43 = vld [vmem:[%s749_s3 + $0x48] sm:$0xff]  ;;  %v219_v45 = vld [vmem:[%s749_s3 + $0x50] sm:$0xff]  ;;  %v220_v46 = vld [vmem:[%s749_s3 + $0x58] sm:$0xff] }
  0x1d   :  { %474 = vmatprep.subr.bf16.mxu0 %v553_v0  ;;  %v484_v44 = vpack.c.bf16 %v218_v43, %v217_v42  ;;  %v487_v47 = vpack.c.bf16 %v220_v46, %v219_v45  ;;  %v221_v48 = vld [vmem:[%s749_s3 + $0x60] sm:$0xff]  ;;  %v222_v49 = vld [vmem:[%s749_s3 + $0x68] sm:$0xff]  ;;  %v223_v56 = vld [vmem:[%s749_s3 + $0x70] sm:$0xff] }
  0x1e   :  { %v490_v50 = vpack.c.bf16 %v222_v49, %v221_v48  ;;  %v326_v51 = vld [vmem:[%s750_s4] ss:$0 sm:$0xff]  ;;  %v224_v57 = vld [vmem:[%s749_s3 + $0x78] sm:$0xff]  ;;  %v328_v59 = vld [vmem:[%s750_s4 + $0x1] ss:$0 sm:$0xff]  ;;  %s556_s3 = smov [#allocation5]  }
  0x1f   :  { %455 = vmatpush3.bf16.msra.mxu1 %v454_v14  ;;  %v493_v58 = vpack.c.bf16 %v224_v57, %v223_v56  ;;  %s317_s21 = sshll.u32 %s556_s3, 4  ;;  %s318_s21 = int_to_ptr.vmem [resolvable:$true] %s317_s21 }
  0x20   :  { %456 = vmatprep.subr.bf16.mxu1 %v553_v0  ;;  %476 = vmatpush3.bf16.msra.mxu0 %v475_v35  ;;  %p531_p9 = scmp.lt.s32.totalorder %s318_s21, %s318_s21 }
  0x21   :  { %477 = vmatprep.subr.bf16.mxu0 %v553_v0 }
  0x23   :  { %458 = vmatpush3.bf16.msra.mxu1 %v457_v17 }
  0x24   :  { %459 = vmatprep.subr.bf16.mxu1 %v553_v0  ;;  %479 = vmatpush3.bf16.msra.mxu0 %v478_v38 }
  0x25   :  { %480 = vmatprep.subr.bf16.mxu0 %v553_v0 }
  0x27   :  { %461 = vmatpush3.bf16.msra.mxu1 %v460_v20 }
  0x28   :  { %462 = vmatprep.subr.bf16.mxu1 %v553_v0  ;;  %482 = vmatpush3.bf16.msra.mxu0 %v481_v41 }
  0x29   :  { %483 = vmatprep.subr.bf16.mxu0 %v553_v0 }
  0x2b   :  { %464 = vmatpush3.bf16.msra.mxu1 %v463_v23 }
  0x2c   :  { %465 = vmatprep.subr.bf16.mxu1 %v553_v0  ;;  %485 = vmatpush3.bf16.msra.mxu0 %v484_v44 }
  0x2d   :  { %486 = vmatprep.subr.bf16.mxu0 %v553_v0 }
  0x2f   :  { %467 = vmatpush3.bf16.msra.mxu1 %v466_v26 }
  0x30   :  { %468 = vmatprep.subr.bf16.mxu1 %v553_v0  ;;  %488 = vmatpush3.bf16.msra.mxu0 %v487_v47 }
  0x31   :  { %489 = vmatprep.subr.bf16.mxu0 %v553_v0 }
  0x33   :  { %470 = vmatpush3.bf16.msra.mxu1 %v469_v29 }
  0x34   :  { %491 = vmatpush3.bf16.msra.mxu0 %v490_v50 }
  0x35   :  { %492 = vmatprep.subr.bf16.mxu0 %v553_v0  ;;  %v329_v0 = vld [vmem:[%s750_s4 + $0x2] ss:$0 sm:$0xff]  ;;  %s526_s4 = scalar_lea.vmem %s318_s21, 128 }
  0x36   :  { %p527_p8 = scmp.ne.s32.totalorder %s318_s21, %s526_s4  ;;  %p532_p10 = scmp.lt.s32.totalorder %s526_s4, %s526_s4 }
  0x38   :  { %494 = vmatpush3.bf16.msra.mxu0 %v493_v58  ;;  %p533_p11 = por %p532_p10, %p531_p9 }
  0x3a   :  { %p534_p12 = pnand %p533_p11, %p527_p8 }
  0xec   :  { %v113_v52 = vpop.f32.mrb[0].mxu0 }
  0xed   :  { %v114_v53 = vadd.f32 %v326_v51, %v113_v52  ;;  %v373_v54 = vpop.f32.mrb[1].mxu0 }
  0xef   :  { %v117_v55 = vmax.f32 %v114_v53, 0.0 }
  0xf1   :  { %407 = vmatmul.mubr.f32.vlgmr.msra.gmra.mrb[0].mxu1 %v117_v55 }
 0x1c4   :  { %v204_v60 = vpop.f32.mrb[0].mxu1 }
 0x1c5   :  { %v205_v61 = vadd.f32 %v328_v59, %v204_v60  ;;  %v408_v62 = vpop.f32.mrb[1].mxu1 }
 0x1c7   :  { %v208_v63 = vmax.f32 %v205_v61, 0.0 }
 0x1c9   :  { %442 = vmatmul.mubr.f32.vlgmr.msra.gmra.mrb[2].mxu0 %v208_v63 }
 0x29c   :  { %v295_v1 = vpop.f32.mrb[2].mxu0 }
 0x29d   :  { %v296_v2 = vadd.f32 %v329_v0, %v295_v1  ;;  %v443_v3 = vpop.f32.mrb[3].mxu0 }
 0x29f   :  { %v299_v4 = vsel %vm43_vm1, %v296_v2, -inf }
 0x2a0   :  { %300 = vmax.xlane.f32.xlu0 %v299_v4 }
 0x32d   :  { %v301_v5 = vpop.xlane.xlu0 %300 }
 0x32e   :  { %v302_v6 = vsub.f32 %v296_v2, %v301_v5 }
 0x330   :  { %v303_v7 = vmul.f32 1.442695, %v302_v6 }
 0x332   :  { %500 = vpow2.f32 %v303_v7 }
 0x33c   :  { %v501_v8 = vpop.eup %500 }
 0x33d   :  { %v305_v9 = vsel %vm43_vm1, %v501_v8, 0.0 }
 0x33e   :  { %306 = vadd.xlane.f32.xlu0 %v305_v9 }
 0x3cb   :  { %v307_v10 = vpop.xlane.xlu0 %306 }
 0x3cc   :  { %502 = vrcp.f32 %v307_v10 }
 0x3d6   :  { %v503_v11 = vpop.eup %502 }
 0x3d7   :  { %v309_v12 = vmul.f32 %v503_v11, %v501_v8 }
 0x3d9   :  { %310 = vst.msk [vmem:[#allocation5] sm:$0xff] %vm43_vm1, %v309_v12 }
 0x3da   :  { %537 = shalt.err (!%p534_p12)
}
 0x3db   :  { %s538_s24 = scalar_lea.hbm %s751_s5, 128 }
 0x3dc   :  { %p539_p13 = scmp.ne.s32.totalorder %s751_s5, %s538_s24  ;;  %p542_p0 = scmp.lt.u32.totalorder %s538_s24, %s751_s5 }
 0x3de   :  { %p544_p1 = pnand %p542_p0, %p539_p13 }
 0x3e0   :  { %547 = shalt.err (!%p544_p1)
}
 0x3e1   :  { %320 = dma.vmem_to_hbm [thread:$0]  %s318_s21, 128, %s751_s5, [#allocation4]  }
 0x3e2   :  { %550 = dma.done.wait [#allocation4], 128  }
 0x3e3   :  { %551 = vsyncadd [#allocation4], 4294967168 }
 0x3e4   :  { %324 = vsyncpa [#allocation3], 1 }
 0x3e5   :  { %325 = vsyncpa [#allocation4], 1 }

</bundles_post_ra>
